<compile_context>
chip_gen: v7x
topology: tpu7x:2x2x1
jax: 0.10.0
libtpu: 0.0.40
codegen_flags: <defaults>
</compile_context>

<pallas_src>
import functools

import jax
import jax.numpy as jnp
from jax import lax
from jax.experimental import pallas as pl
from jax.experimental.pallas import tpu as pltpu

_EPS = 1e-8
_TILE_TARGET_BYTES = 2 << 20      # ~2 MiB of f32 working set per input per grid step
_VMEM_CAP_BYTES = 28 << 20        # safe under v7x's 32 MiB scoped / 64 MiB physical VMEM


def _cosine_partial_kernel(pred_ref, gt_ref, out_ref, *, group, d, valid_rows):
    """One grid step: partial SUM of per-row cosines over a (tile_r, group*d) block.

    pred_ref / gt_ref: VMEM blocks with `group` original rows folded per 128-lane row
    (lane-dense when group > 1).  out_ref: (1, 1) SMEM block with this tile's partial sum.
    """
    p = pred_ref[...].astype(jnp.float32)          # (R, group*d)
    g = gt_ref[...].astype(jnp.float32)

    def seg_sums(prod):
        # Per-original-row sums of a lane-dense product: `group` static lane slices.
        return [
            jnp.sum(prod[:, j * d:(j + 1) * d], axis=-1, keepdims=True)   # (R, 1)
            for j in range(group)
        ]

    # Dense elementwise products (full-width vregs), then segmented per-row reduces.
    dots = seg_sums(p * g)
    p2s = seg_sums(p * p)
    g2s = seg_sums(g * g)

    acc = None
    for dot, p2, g2 in zip(dots, p2s, g2s):
        # torch clamps the *product* of squared norms by eps^2 before the sqrt.
        cos = dot * lax.rsqrt(jnp.maximum(p2 * g2, _EPS * _EPS))
        acc = cos if acc is None else acc + cos

    # Mask overhang rows of the (possibly partial) last tile: those sublanes were never
    # DMA'd and may hold garbage (even NaN/Inf); jnp.where discards them regardless.
    tile_r = acc.shape[0]
    row_id = pl.program_id(0) * tile_r + lax.broadcasted_iota(
        jnp.int32, (tile_r, 1), 0)
    acc = jnp.where(row_id < valid_rows, acc, 0.0)

    out_ref[0, 0] = jnp.sum(acc)


def _choose_tile_rows(rows, phys_width, dtype, override=None):
    itemsize = jnp.dtype(dtype).itemsize
    sub_align = max(8, 32 // itemsize)             # f32 -> 8, bf16 -> 16, int8/fp8 -> 32
    if override is not None:
        target = int(override)
    else:
        # Size tiles off the f32 working set (the in-kernel upcast temporaries dominate
        # VMEM), not the raw input dtype.
        target = max(1, _TILE_TARGET_BYTES // (phys_width * 4))
    if target >= rows:
        return rows                                # full extent: always a legal block
    target = max(sub_align, (target // sub_align) * sub_align)
    return min(target, rows)


def cosine_similarity_loss(pred, gt, *, tile_rows=None):
    """pred, gt: (B, N, D).  Returns scalar f32 == CosineSimilarity()(pred, gt)."""
    assert pred.shape == gt.shape and pred.ndim == 3
    b, n, d = pred.shape
    total = b * n

    # Lane packing: fold G = 128 // D consecutive rows into one 128-lane row so every
    # vreg lane carries real data.  This is a pure reshape of contiguous row-major data
    # -- no HBM copy (unlike the jnp.pad the previous version did).
    if d < 128 and 128 % d == 0 and total % (128 // d) == 0:
        group = 128 // d
    else:
        group = 1                                  # fallback: unpacked (lane-sparse) rows
    rows = total // group
    width = group * d

    pred2 = pred.reshape(rows, width)
    gt2 = gt.reshape(rows, width)

    phys_width = 128 * (-(-width // 128))          # lane-padded width actually held in VMEM
    tile_r = _choose_tile_rows(rows, phys_width, pred.dtype, tile_rows)
    num_tiles = pl.cdiv(rows, tile_r)

    # VMEM budget from *physical* tile bytes: 2 inputs x 2 pipeline buffers, plus the f32
    # upcasts and the three products the kernel may hold live (worst case).
    itemsize = jnp.dtype(pred.dtype).itemsize
    in_tile_bytes = tile_r * phys_width * itemsize
    f32_tmp_bytes = 5 * tile_r * phys_width * 4
    vmem_needed = 4 * in_tile_bytes + f32_tmp_bytes
    vmem_limit = int(min(_VMEM_CAP_BYTES, max(8 << 20, vmem_needed + (6 << 20))))

    kernel = functools.partial(
        _cosine_partial_kernel, group=group, d=d, valid_rows=rows)

    partials = pl.pallas_call(
        kernel,
        out_shape=jax.ShapeDtypeStruct((num_tiles, 1), jnp.float32),
        grid=(num_tiles,),
        in_specs=[
            pl.BlockSpec((tile_r, width), lambda i: (i, 0)),
            pl.BlockSpec((tile_r, width), lambda i: (i, 0)),
        ],
        out_specs=pl.BlockSpec(
            (1, 1), lambda i: (i, 0), memory_space=pltpu.MemorySpace.SMEM),
        compiler_params=pltpu.CompilerParams(
            dimension_semantics=("parallel",),
            vmem_limit_bytes=vmem_limit,
        ),
    )(pred2, gt2)

    # Exact mean over the original B*N rows (overhang rows were masked to 0 in-kernel).
    return jnp.sum(partials) / jnp.float32(total)


def _reference(pred, gt):
    # torch.nn.CosineSimilarity(dim=2)(pred, gt).mean(1).mean(0)
    dot = jnp.sum(pred * gt, axis=2)
    p2 = jnp.sum(pred * pred, axis=2)
    g2 = jnp.sum(gt * gt, axis=2)
    cos = dot / jnp.sqrt(jnp.maximum(p2 * g2, _EPS * _EPS))
    return jnp.mean(jnp.mean(cos, axis=1), axis=0)


if __name__ == "__main__":
    key = jax.random.PRNGKey(0)
    k1, k2, k3, k4 = jax.random.split(key, 4)

    # Shapes implied by the forward: (batch=2, seq=8, hidden=32).
    B, N, D = 2, 8, 32
    pred = jax.random.normal(k1, (B, N, D), dtype=jnp.float32)
    gt = jax.random.normal(k2, (B, N, D), dtype=jnp.float32)
    out = cosine_similarity_loss(pred, gt)
    jax.block_until_ready(out)
    ref = _reference(pred, gt)
    assert jnp.allclose(out, ref, rtol=1e-5, atol=1e-5), (out, ref)

    # Second small case forcing a multi-step grid with a partial last tile, so the
    # in-kernel overhang-row masking (the jnp.pad replacement) is exercised.
    B2, N2, D2 = 2, 26, 32           # 52 rows -> 13 packed rows; tile_rows=8 -> 2 tiles
    pred2 = jax.random.normal(k3, (B2, N2, D2), dtype=jnp.float32)
    gt2 = jax.random.normal(k4, (B2, N2, D2), dtype=jnp.float32)
    out2 = cosine_similarity_loss(pred2, gt2, tile_rows=8)
    jax.block_until_ready(out2)
    ref2 = _reference(pred2, gt2)
    assert jnp.allclose(out2, ref2, rtol=1e-5, atol=1e-5), (out2, ref2)

    print("KERNEL_OK")
</pallas_src>

<mosaic_0001>
module attributes {stable_mosaic.version = 11 : i64} {
  func.func @_cosine_partial_kernel(%arg0: i32, %arg1: memref<4x128xf32, #tpu.memory_space<vmem>>, %arg2: memref<4x128xf32, #tpu.memory_space<vmem>>, %arg3: memref<1x1xf32, #tpu.memory_space<smem>>) attributes {dimension_semantics = [#tpu.dimension_semantics<parallel>], iteration_bounds = array<i64: 1>, scalar_prefetch = 0 : i64, scratch_operands = 0 : i64, tpu.core_type = #tpu.core_type<tc>, window_params = [{transform_indices = @transform_0, window_bounds = array<i64: 4, 128>}, {transform_indices = @transform_1, window_bounds = array<i64: 4, 128>}, {transform_indices = @transform_2, window_bounds = array<i64: 1, 1>}]} {
    %c0 = arith.constant 0 : index
    %c0_0 = arith.constant 0 : index
    %0 = vector.load %arg1[%c0, %c0_0] : memref<4x128xf32, #tpu.memory_space<vmem>>, vector<4x128xf32>
    %c0_1 = arith.constant 0 : index
    %c0_2 = arith.constant 0 : index
    %1 = vector.load %arg2[%c0_1, %c0_2] : memref<4x128xf32, #tpu.memory_space<vmem>>, vector<4x128xf32>
    %2 = arith.mulf %0, %1 : vector<4x128xf32>
    %3 = vector.extract_strided_slice %2 {offsets = [0, 0], sizes = [4, 32], strides = [1, 1]} : vector<4x128xf32> to vector<4x32xf32>
    %cst = arith.constant dense<0.000000e+00> : vector<4xf32>
    %4 = vector.multi_reduction <add>, %3, %cst [1] : vector<4x32xf32> to vector<4xf32>
    %5 = vector.shape_cast %4 : vector<4xf32> to vector<4x1xf32>
    %6 = vector.extract_strided_slice %2 {offsets = [0, 32], sizes = [4, 32], strides = [1, 1]} : vector<4x128xf32> to vector<4x32xf32>
    %cst_3 = arith.constant dense<0.000000e+00> : vector<4xf32>
    %7 = vector.multi_reduction <add>, %6, %cst_3 [1] : vector<4x32xf32> to vector<4xf32>
    %8 = vector.shape_cast %7 : vector<4xf32> to vector<4x1xf32>
    %9 = vector.extract_strided_slice %2 {offsets = [0, 64], sizes = [4, 32], strides = [1, 1]} : vector<4x128xf32> to vector<4x32xf32>
    %cst_4 = arith.constant dense<0.000000e+00> : vector<4xf32>
    %10 = vector.multi_reduction <add>, %9, %cst_4 [1] : vector<4x32xf32> to vector<4xf32>
    %11 = vector.shape_cast %10 : vector<4xf32> to vector<4x1xf32>
    %12 = vector.extract_strided_slice %2 {offsets = [0, 96], sizes = [4, 32], strides = [1, 1]} : vector<4x128xf32> to vector<4x32xf32>
    %cst_5 = arith.constant dense<0.000000e+00> : vector<4xf32>
    %13 = vector.multi_reduction <add>, %12, %cst_5 [1] : vector<4x32xf32> to vector<4xf32>
    %14 = vector.shape_cast %13 : vector<4xf32> to vector<4x1xf32>
    %15 = arith.mulf %0, %0 : vector<4x128xf32>
    %16 = vector.extract_strided_slice %15 {offsets = [0, 0], sizes = [4, 32], strides = [1, 1]} : vector<4x128xf32> to vector<4x32xf32>
    %cst_6 = arith.constant dense<0.000000e+00> : vector<4xf32>
    %17 = vector.multi_reduction <add>, %16, %cst_6 [1] : vector<4x32xf32> to vector<4xf32>
    %18 = vector.shape_cast %17 : vector<4xf32> to vector<4x1xf32>
    %19 = vector.extract_strided_slice %15 {offsets = [0, 32], sizes = [4, 32], strides = [1, 1]} : vector<4x128xf32> to vector<4x32xf32>
    %cst_7 = arith.constant dense<0.000000e+00> : vector<4xf32>
    %20 = vector.multi_reduction <add>, %19, %cst_7 [1] : vector<4x32xf32> to vector<4xf32>
    %21 = vector.shape_cast %20 : vector<4xf32> to vector<4x1xf32>
    %22 = vector.extract_strided_slice %15 {offsets = [0, 64], sizes = [4, 32], strides = [1, 1]} : vector<4x128xf32> to vector<4x32xf32>
    %cst_8 = arith.constant dense<0.000000e+00> : vector<4xf32>
    %23 = vector.multi_reduction <add>, %22, %cst_8 [1] : vector<4x32xf32> to vector<4xf32>
    %24 = vector.shape_cast %23 : vector<4xf32> to vector<4x1xf32>
    %25 = vector.extract_strided_slice %15 {offsets = [0, 96], sizes = [4, 32], strides = [1, 1]} : vector<4x128xf32> to vector<4x32xf32>
    %cst_9 = arith.constant dense<0.000000e+00> : vector<4xf32>
    %26 = vector.multi_reduction <add>, %25, %cst_9 [1] : vector<4x32xf32> to vector<4xf32>
    %27 = vector.shape_cast %26 : vector<4xf32> to vector<4x1xf32>
    %28 = arith.mulf %1, %1 : vector<4x128xf32>
    %29 = vector.extract_strided_slice %28 {offsets = [0, 0], sizes = [4, 32], strides = [1, 1]} : vector<4x128xf32> to vector<4x32xf32>
    %cst_10 = arith.constant dense<0.000000e+00> : vector<4xf32>
    %30 = vector.multi_reduction <add>, %29, %cst_10 [1] : vector<4x32xf32> to vector<4xf32>
    %31 = vector.shape_cast %30 : vector<4xf32> to vector<4x1xf32>
    %32 = vector.extract_strided_slice %28 {offsets = [0, 32], sizes = [4, 32], strides = [1, 1]} : vector<4x128xf32> to vector<4x32xf32>
    %cst_11 = arith.constant dense<0.000000e+00> : vector<4xf32>
    %33 = vector.multi_reduction <add>, %32, %cst_11 [1] : vector<4x32xf32> to vector<4xf32>
    %34 = vector.shape_cast %33 : vector<4xf32> to vector<4x1xf32>
    %35 = vector.extract_strided_slice %28 {offsets = [0, 64], sizes = [4, 32], strides = [1, 1]} : vector<4x128xf32> to vector<4x32xf32>
    %cst_12 = arith.constant dense<0.000000e+00> : vector<4xf32>
    %36 = vector.multi_reduction <add>, %35, %cst_12 [1] : vector<4x32xf32> to vector<4xf32>
    %37 = vector.shape_cast %36 : vector<4xf32> to vector<4x1xf32>
    %38 = vector.extract_strided_slice %28 {offsets = [0, 96], sizes = [4, 32], strides = [1, 1]} : vector<4x128xf32> to vector<4x32xf32>
    %cst_13 = arith.constant dense<0.000000e+00> : vector<4xf32>
    %39 = vector.multi_reduction <add>, %38, %cst_13 [1] : vector<4x32xf32> to vector<4xf32>
    %40 = vector.shape_cast %39 : vector<4xf32> to vector<4x1xf32>
    %41 = arith.mulf %18, %31 : vector<4x1xf32>
    %cst_14 = arith.constant 1.000000e-16 : f32
    %42 = vector.broadcast %cst_14 : f32 to vector<4x1xf32>
    %43 = arith.maximumf %41, %42 : vector<4x1xf32>
    %44 = math.rsqrt %43 : vector<4x1xf32>
    %45 = arith.mulf %5, %44 : vector<4x1xf32>
    %46 = arith.mulf %21, %34 : vector<4x1xf32>
    %cst_15 = arith.constant 1.000000e-16 : f32
    %47 = vector.broadcast %cst_15 : f32 to vector<4x1xf32>
    %48 = arith.maximumf %46, %47 : vector<4x1xf32>
    %49 = math.rsqrt %48 : vector<4x1xf32>
    %50 = arith.mulf %8, %49 : vector<4x1xf32>
    %51 = arith.addf %45, %50 : vector<4x1xf32>
    %52 = arith.mulf %24, %37 : vector<4x1xf32>
    %cst_16 = arith.constant 1.000000e-16 : f32
    %53 = vector.broadcast %cst_16 : f32 to vector<4x1xf32>
    %54 = arith.maximumf %52, %53 : vector<4x1xf32>
    %55 = math.rsqrt %54 : vector<4x1xf32>
    %56 = arith.mulf %11, %55 : vector<4x1xf32>
    %57 = arith.addf %51, %56 : vector<4x1xf32>
    %58 = arith.mulf %27, %40 : vector<4x1xf32>
    %cst_17 = arith.constant 1.000000e-16 : f32
    %59 = vector.broadcast %cst_17 : f32 to vector<4x1xf32>
    %60 = arith.maximumf %58, %59 : vector<4x1xf32>
    %61 = math.rsqrt %60 : vector<4x1xf32>
    %62 = arith.mulf %14, %61 : vector<4x1xf32>
    %63 = arith.addf %57, %62 : vector<4x1xf32>
    %c4_i32 = arith.constant 4 : i32
    %64 = arith.muli %arg0, %c4_i32 : i32
    %65 = tpu.iota {dimensions = array<i32: 0>} : vector<4x1xi32>
    %66 = vector.broadcast %64 : i32 to vector<4x1xi32>
    %67 = arith.addi %66, %65 : vector<4x1xi32>
    %c4_i32_18 = arith.constant 4 : i32
    %68 = vector.broadcast %c4_i32_18 : i32 to vector<4x1xi32>
    %69 = arith.cmpi slt, %67, %68 : vector<4x1xi32>
    %cst_19 = arith.constant 0.000000e+00 : f32
    %70 = vector.broadcast %cst_19 : f32 to vector<4x1xf32>
    %71 = arith.select %69, %63, %70 : vector<4x1xi1>, vector<4x1xf32>
    %72 = vector.shape_cast %71 : vector<4x1xf32> to vector<1x4x1xf32>
    %cst_20 = arith.constant dense<0.000000e+00> : vector<1xf32>
    %73 = vector.multi_reduction <add>, %72, %cst_20 [1, 2] : vector<1x4x1xf32> to vector<1xf32>
    %74 = vector.shape_cast %73 : vector<1xf32> to vector<1x1x1xf32>
    %75 = vector.extract %74[0, 0, 0] : f32 from vector<1x1x1xf32>
    %c0_21 = arith.constant 0 : index
    %c0_22 = arith.constant 0 : index
    %76 = memref.load %arg3[%c0_21, %c0_22] : memref<1x1xf32, #tpu.memory_space<smem>>
    memref.store %75, %arg3[%c0_21, %c0_22] : memref<1x1xf32, #tpu.memory_space<smem>>
    return
  }
  func.func @transform_0(%arg0: i32) -> (i32, i32) {
    %c0_i32 = arith.constant 0 : i32
    %c0_i32_0 = arith.constant 0 : i32
    return %arg0, %c0_i32 : i32, i32
  }
  func.func @transform_1(%arg0: i32) -> (i32, i32) {
    %c0_i32 = arith.constant 0 : i32
    %c0_i32_0 = arith.constant 0 : i32
    return %arg0, %c0_i32 : i32, i32
  }
  func.func @transform_2(%arg0: i32) -> (i32, i32) {
    %c0_i32 = arith.constant 0 : i32
    %c0_i32_0 = arith.constant 0 : i32
    return %arg0, %c0_i32 : i32, i32
  }
}

</mosaic_0001>

<bundles_post_ra>
// kernel: tpu_custom_call.1
= control target key start
LH: loop header
LB: loop body
LE: loop exit
PB: predicated region body
PF: predicated region fallthrough
CT: control target
= control target key end

     0   :  { %7 = vsyncpa [#allocation3], 0  ;;  %s307_s0 = inlined_call_operand.hbm [shape: f32[4,128], index: 0, kind: input, shape index: {}]   ;;  %s308_s1 = inlined_call_operand.hbm [shape: f32[4,128], index: 1, kind: input, shape index: {}]   ;;  %s309_s2 = inlined_call_operand.hbm [shape: f32[1,1], index: 2, kind: output, shape index: {}]  }
   0x1   :  { %8 = vsyncpa [#allocation6], 0 }
   0x2   :  { %9 = vsyncpa [#allocation4], 0  ;;  %s238_s9 = smov [#allocation2]   ;;  %s239_s11 = smov [#allocation5]  }
   0x3   :  { %s16_s10 = sshll.u32 %s238_s9, 4  ;;  %s26_s12 = sshll.u32 %s239_s11, 4  ;;  %s17_s10 = int_to_ptr.vmem [resolvable:$true] %s16_s10  ;;  %s27_s12 = int_to_ptr.vmem [resolvable:$true] %s26_s12 }
   0x4   :  { %s178_s15 = scalar_lea.hbm %s307_s0, 64 }
   0x5   :  { %p179_p0 = scmp.ne.s32.totalorder %s307_s0, %s178_s15  ;;  %p182_p1 = scmp.lt.u32.totalorder %s178_s15, %s307_s0 }
   0x7   :  { %p184_p2 = pnand %p182_p1, %p179_p0 }
   0x9   :  { %187 = shalt.err (!%p184_p2)
}
   0xa   :  { %s188_s20 = scalar_lea.vmem %s17_s10, 64  ;;  %p193_p4 = scmp.lt.s32.totalorder %s17_s10, %s17_s10 }
   0xb   :  { %p189_p3 = scmp.ne.s32.totalorder %s17_s10, %s188_s20  ;;  %p194_p5 = scmp.lt.s32.totalorder %s188_s20, %s188_s20 }
   0xd   :  { %p195_p6 = por %p194_p5, %p193_p4 }
   0xf   :  { %p196_p7 = pnand %p195_p6, %p189_p3 }
  0x11   :  { %199 = shalt.err (!%p196_p7)
}
  0x12   :  { %19 = dma.hbm_to_vmem [thread:$0]  %s307_s0, 64, %s17_s10, [#allocation3]  }
  0x13   :  { %s200_s25 = scalar_lea.hbm %s308_s1, 64 }
  0x14   :  { %p201_p8 = scmp.ne.s32.totalorder %s308_s1, %s200_s25  ;;  %p204_p9 = scmp.lt.u32.totalorder %s200_s25, %s308_s1 }
  0x16   :  { %p206_p10 = pnand %p204_p9, %p201_p8 }
  0x18   :  { %209 = shalt.err (!%p206_p10)
}
  0x19   :  { %s210_s30 = scalar_lea.vmem %s27_s12, 64  ;;  %p215_p12 = scmp.lt.s32.totalorder %s27_s12, %s27_s12 }
  0x1a   :  { %p211_p11 = scmp.ne.s32.totalorder %s27_s12, %s210_s30  ;;  %p216_p13 = scmp.lt.s32.totalorder %s210_s30, %s210_s30 }
  0x1c   :  { %p217_p0 = por %p216_p13, %p215_p12 }
  0x1e   :  { %p218_p1 = pnand %p217_p0, %p211_p11 }
  0x20   :  { %221 = shalt.err (!%p218_p1)
}
  0x21   :  { %29 = dma.hbm_to_vmem [thread:$0]  %s308_s1, 64, %s27_s12, [#allocation6]  }
  0x22   :  { %232 = dma.done.wait [#allocation3], 64  }
  0x23   :  { %233 = vsyncadd [#allocation3], 4294967232 }
  0x24   :  { %234 = dma.done.wait [#allocation6], 64  }
  0x25   :  { %235 = vsyncadd [#allocation6], 4294967232  ;;  %v36_v0 = vld [vmem:[#allocation2] sm:$0xf]  ;;  %v37_v1 = vld [vmem:[#allocation5] sm:$0xf]  ;;  %v128_v47 = vlaneseq }
  0x26   :  { %v62_v2 = vmul.f32 %v36_v0, %v36_v0  ;;  %s240_s4 = smov 96   ;;  %s241_s5 = smov 64   ;;  %v85_v3 = vmul.f32 %v37_v1, %v37_v1  ;;  %v38_v4 = vmul.f32 %v37_v1, %v36_v0  ;;  %vm39_vm0 = vcmask 257024  }
  0x27   :  { %s242_s6 = smov 32   ;;  %v129_v53 = vshrl.u32 %v128_v47, 7  ;;  %vm134_vm2 = vcmask 3072   ;;  %s222_s9 = scalar_lea.hbm %s309_s2, 16 }
  0x28   :  { %67 = vrot.lane.b32.xlu0 %v62_v2, %s240_s4  ;;  %73 = vrot.lane.b32.xlu1 %v62_v2, %s241_s5  ;;  %v63_v5 = vsel %vm39_vm0, %v62_v2, 0.0  ;;  %v40_v6 = vsel %vm39_vm0, %v38_v4, 0.0  ;;  %v86_v7 = vsel %vm39_vm0, %v85_v3, 0.0  ;;  %p223_p2 = scmp.ne.s32.totalorder %s309_s2, %s222_s9  ;;  %p226_p3 = scmp.lt.u32.totalorder %s222_s9, %s309_s2 }
  0x29   :  { %vm132_vm1 = vcmp.lt.s32.totalorder %v129_v53, 4 }
  0x2a   :  { %p228_p4 = pnand %p226_p3, %p223_p2 }
  0x2c   :  { %90 = vrot.lane.b32.xlu0 %v85_v3, %s240_s4  ;;  %96 = vrot.lane.b32.xlu1 %v85_v3, %s241_s5 }
  0x30   :  { %102 = vrot.lane.b32.xlu1 %v85_v3, %s242_s6  ;;  %79 = vrot.lane.b32.xlu0 %v62_v2, %s242_s6 }
  0x34   :  { %44 = vrot.lane.b32.xlu0 %v38_v4, %s240_s4  ;;  %50 = vrot.lane.b32.xlu1 %v38_v4, %s241_s5 }
  0x38   :  { %56 = vrot.lane.b32.xlu0 %v38_v4, %s242_s6 }
  0x57   :  { %64 = vadd.xlane.f32.xlu0 %v63_v5 }
  0x58   :  { %41 = vadd.xlane.f32.xlu1 %v40_v6 }
  0x5c   :  { %87 = vadd.xlane.f32.xlu1 %v86_v7 }
  0x9a   :  { %v68_v8 = vpop.permute.xlu0 %67  ;;  %v74_v9 = vpop.permute.xlu1 %73 }
  0x9b   :  { %v70_v10 = vsel %vm39_vm0, %v68_v8, 0.0  ;;  %v76_v11 = vsel %vm39_vm0, %v74_v9, 0.0 }
  0x9c   :  { %71 = vadd.xlane.f32.xlu0 %v70_v10  ;;  %77 = vadd.xlane.f32.xlu1 %v76_v11 }
  0x9e   :  { %v91_v12 = vpop.permute.xlu0 %90  ;;  %v97_v13 = vpop.permute.xlu1 %96 }
  0x9f   :  { %v93_v14 = vsel %vm39_vm0, %v91_v12, 0.0  ;;  %v99_v15 = vsel %vm39_vm0, %v97_v13, 0.0 }
  0xa0   :  { %94 = vadd.xlane.f32.xlu0 %v93_v14 }
  0xa2   :  { %v103_v16 = vpop.permute.xlu1 %102  ;;  %v80_v17 = vpop.permute.xlu0 %79 }
  0xa3   :  { %v82_v18 = vsel %vm39_vm0, %v80_v17, 0.0  ;;  %v105_v19 = vsel %vm39_vm0, %v103_v16, 0.0 }
  0xa4   :  { %100 = vadd.xlane.f32.xlu0 %v99_v15  ;;  %83 = vadd.xlane.f32.xlu1 %v82_v18 }
  0xa6   :  { %v45_v20 = vpop.permute.xlu0 %44  ;;  %v51_v21 = vpop.permute.xlu1 %50 }
  0xa7   :  { %v47_v22 = vsel %vm39_vm0, %v45_v20, 0.0  ;;  %v53_v23 = vsel %vm39_vm0, %v51_v21, 0.0 }
  0xa8   :  { %106 = vadd.xlane.f32.xlu0 %v105_v19  ;;  %48 = vadd.xlane.f32.xlu1 %v47_v22 }
  0xaa   :  { %v57_v24 = vpop.permute.xlu0 %56 }
  0xab   :  { %v59_v25 = vsel %vm39_vm0, %v57_v24, 0.0 }
  0xac   :  { %54 = vadd.xlane.f32.xlu0 %v53_v23  ;;  %60 = vadd.xlane.f32.xlu1 %v59_v25 }
  0xe4   :  { %v65_v27 = vpop.xlane.xlu0 %64 }
  0xe5   :  { %v42_v26 = vpop.xlane.xlu1 %41 }
  0xe9   :  { %v88_v28 = vpop.xlane.xlu1 %87 }
  0xea   :  { %v108_v30 = vmul.f32 %v88_v28, %v65_v27 }
  0xec   :  { %v109_v34 = vmax.f32 %v108_v30, 1e-16 }
 0x129   :  { %v72_v29 = vpop.xlane.xlu0 %71  ;;  %v78_v33 = vpop.xlane.xlu1 %77 }
 0x12d   :  { %v95_v31 = vpop.xlane.xlu0 %94 }
 0x12e   :  { %v112_v32 = vmul.f32 %v95_v31, %v72_v29 }
 0x130   :  { %v113_v35 = vmax.f32 %v112_v32, 1e-16 }
 0x131   :  { %v101_v36 = vpop.xlane.xlu0 %100  ;;  %v84_v38 = vpop.xlane.xlu1 %83 }
 0x132   :  { %170 = vrsqrt.f32 %v113_v35  ;;  %v117_v37 = vmul.f32 %v101_v36, %v78_v33 }
 0x133   :  { %172 = vrsqrt.f32 %v109_v34 }
 0x134   :  { %v118_v39 = vmax.f32 %v117_v37, 1e-16 }
 0x135   :  { %v107_v40 = vpop.xlane.xlu0 %106  ;;  %v49_v44 = vpop.xlane.xlu1 %48 }
 0x136   :  { %174 = vrsqrt.f32 %v118_v39  ;;  %v122_v41 = vmul.f32 %v107_v40, %v84_v38 }
 0x138   :  { %v123_v42 = vmax.f32 %v122_v41, 1e-16 }
 0x139   :  { %v55_v46 = vpop.xlane.xlu0 %54  ;;  %v61_v52 = vpop.xlane.xlu1 %60 }
 0x13a   :  { %176 = vrsqrt.f32 %v123_v42 }
 0x13c   :  { %v171_v43 = vpop.eup %170 }
 0x13d   :  { %v173_v45 = vpop.eup %172  ;;  %v115_v48 = vmul.f32 %v171_v43, %v49_v44 }
 0x13e   :  { %v111_v50 = vmul.f32 %v173_v45, %v42_v26 }
 0x140   :  { %v175_v49 = vpop.eup %174  ;;  %v116_v54 = vadd.f32 %v115_v48, %v111_v50 }
 0x141   :  { %v120_v51 = vmul.f32 %v175_v49, %v55_v46 }
 0x143   :  { %v121_v56 = vadd.f32 %v120_v51, %v116_v54 }
 0x144   :  { %v177_v55 = vpop.eup %176 }
 0x145   :  { %v125_v57 = vmul.f32 %v177_v55, %v61_v52 }
 0x147   :  { %v126_v58 = vadd.f32 %v125_v57, %v121_v56 }
 0x149   :  { %v133_v59 = vsel %vm132_vm1, %v126_v58, 0.0 }
 0x14a   :  { %v135_v60 = vsel %vm134_vm2, %v133_v59, 0.0 }
 0x14b   :  { %136 = vadd.xlane.f32.xlu0 %v135_v60 }
 0x1d8   :  { %v137_v61 = vpop.xlane.xlu0 %136 }
 0x1d9   :  { %v138_v62 = vrot.slane %v137_v61, 4 }
 0x1db   :  { %v139_v63 = vadd.f32 %v138_v62, %v137_v61 }
 0x1dd   :  { %v140_v0 = vrot.slane %v139_v63, 2 }
 0x1df   :  { %v141_v1 = vadd.f32 %v140_v0, %v139_v63 }
 0x1e1   :  { %v142_v2 = vrot.slane %v141_v1, 1 }
 0x1e3   :  { %v143_v3 = vadd.f32 %v142_v2, %v141_v1 }
 0x1e5   :  { %162 = vpush %v143_v3 }
 0x216   :  { %s163_s1 = spop %162 }
 0x217   :  { %146 = sst [smem:[#allocation7]] %s163_s1 }
 0x218   :  { %231 = shalt.err (!%p228_p4)
}
 0x219   :  { %s243_s14 = smov [#allocation7]  }
 0x21a   :  { %154 = dma.smem_to_hbm %s243_s14, 16, %s309_s2, [#allocation4]  }
 0x21b   :  { %236 = dma.done.wait [#allocation4], 16  }
 0x21c   :  { %237 = vsyncadd [#allocation4], 4294967280 }
 0x21d   :  { %158 = sfence }
 0x21e   :  { %159 = vsyncpa [#allocation3], 1 }
 0x21f   :  { %160 = vsyncpa [#allocation6], 1 }
 0x220   :  { %161 = vsyncpa [#allocation4], 1 }

</bundles_post_ra>
